<compile_context>
chip_gen: v6e
topology: v6e:2x2x1
jax: 0.10.0
libtpu: 0.0.40
codegen_flags: <defaults>
</compile_context>

<pallas_src>
import numpy as np
import jax
import jax.numpy as jnp
from jax import lax
from jax.experimental import pallas as pl
from jax.experimental.pallas import tpu as pltpu


def _round_up(a, m):
    return ((a + m - 1) // m) * m


# ---------------------------------------------------------------------------
# Kernel 1: self.down = Linear -> BatchNorm1d (training batch stats) -> ReLU,
# computed transposed ([Cout, N]) and written into the padded [C8, Npad] buffer.
# ---------------------------------------------------------------------------
def _linear_bn_relu_T_kernel(xT_ref, wT_ref, b_ref, gamma_ref, beta_ref, hT_ref):
    c_out = wT_ref.shape[0]
    n = xT_ref.shape[1]
    # Linear (transposed): [Cout, Cin] @ [Cin, N] -> [Cout, N].  Tiny K; single
    # un-tiled MXU call, not a bottleneck.
    h = jnp.dot(wT_ref[...], xT_ref[...],
                preferred_element_type=jnp.float32) + b_ref[...]
    # BatchNorm1d, training mode: biased batch variance over all N nodes
    # (lane-axis reduction), eps=1e-5, affine folded into one scale/shift.
    # TODO(synk): running_mean / running_var are not tracked (eval-mode BN would
    # use them instead of batch statistics).
    mean = jnp.mean(h, axis=1, keepdims=True)
    var = jnp.mean(jnp.square(h - mean), axis=1, keepdims=True)
    scale = gamma_ref[...] * lax.rsqrt(var + 1e-5)
    shift = beta_ref[...] - mean * scale
    act = jnp.maximum(h * scale + shift, 0.0)
    # Zero-fill the padded buffer (padded rows/cols must never win the
    # neighbourhood max and must not be uninitialised VMEM garbage), then store
    # the live [Cout, N] slab (lane-dense store).
    hT_ref[...] = jnp.zeros(hT_ref.shape, hT_ref.dtype)
    hT_ref[0:c_out, 0:n] = act


# ---------------------------------------------------------------------------
# Kernel 2: tgnn.max_pool_neighbor_x
#   out[i, c] = max_{j : adj[i, j] == 1} h[j, c]   (adj includes self loops)
# ---------------------------------------------------------------------------
def _pool_kernel(hT_ref, adj_ref, out_ref, acc_ref):
    j = pl.program_id(1)

    @pl.when(j == 0)
    def _init():
        acc_ref[...] = jnp.full(acc_ref.shape, -jnp.inf, dtype=acc_ref.dtype)

    # Additive mask, built ONCE per (dst, src) tile and reused for every channel:
    # 0.0 where there is an edge, -1e30 where there is none.
    neg_mask = (adj_ref[...].astype(jnp.float32) - 1.0) * 1e30       # [Tdst, Tsrc]
    hT = hT_ref[...]                                                 # [C8, Tsrc]

    c_out = out_ref.shape[-1]
    cols = []
    for c in range(c_out):               # small static unroll over output channels
        # Lane-dense [Tdst, Tsrc] broadcast-add (VALU) + lane reduction (XLU):
        # no rank-3 [Tdst, Tsrc, C] intermediate, full 128-lane occupancy.
        t = neg_mask + hT[c:c + 1, :]
        cols.append(jnp.max(t, axis=-1, keepdims=True))              # [Tdst, 1]
    tile_max = jnp.concatenate(cols, axis=-1)                        # [Tdst, Cout]
    acc_ref[...] = jnp.maximum(acc_ref[...], tile_max)

    @pl.when(j == pl.num_programs(1) - 1)
    def _store():
        out_ref[...] = acc_ref[...]


# ---------------------------------------------------------------------------
# Wrapper: Linear+BN+ReLU prologue -> dense-adjacency neighbourhood max pool.
# ---------------------------------------------------------------------------
def point_trans_down_features(x, w, b, gamma, beta, adj_i8, *,
                              tile_dst=256, tile_src=2048):
    """h = ReLU(BN(Linear(x))); out[i] = max_{j: adj[i,j]==1} h[j].

    adj_i8 must be a dense int8 adjacency that already contains self loops."""
    n, _ = x.shape
    c_out = w.shape[1]

    # Clamp tiles for small problems; keep int8 sublane (32) / lane (128)
    # alignment so every BlockSpec satisfies the (8,128) rule.
    td = min(tile_dst, _round_up(n, 32))
    ts = min(tile_src, _round_up(n, 128))
    n_dst = _round_up(n, td)
    n_src = _round_up(n, ts)
    c8 = _round_up(c_out, 8)

    # Prologue: produces h already transposed + zero-padded to [C8, Npad]
    # (exactly the layout the pooling kernel streams), lane-dense writes.
    hT = pl.pallas_call(
        _linear_bn_relu_T_kernel,
        out_shape=jax.ShapeDtypeStruct((c8, n_src), jnp.float32),
    )(x.T, w.T,
      b.reshape(c_out, 1), gamma.reshape(c_out, 1), beta.reshape(c_out, 1))

    # int8 adjacency; pad only when the tiling actually requires it
    # (padded rows/cols carry no edges -> additive mask, never win).
    if adj_i8.shape != (n_dst, n_src):
        adj_p = jnp.zeros((n_dst, n_src), jnp.int8).at[:n, :n].set(adj_i8)
    else:
        adj_p = adj_i8

    grid = (n_dst // td, n_src // ts)
    out = pl.pallas_call(
        _pool_kernel,
        out_shape=jax.ShapeDtypeStruct((n_dst, c_out), jnp.float32),
        grid_spec=pltpu.PrefetchScalarGridSpec(
            num_scalar_prefetch=0,
            grid=grid,
            in_specs=[
                pl.BlockSpec((c8, ts), lambda i, j: (0, j)),      # hT: src tiles
                pl.BlockSpec((td, ts), lambda i, j: (i, j)),      # adj: dst x src
            ],
            out_specs=pl.BlockSpec((td, c_out), lambda i, j: (i, 0)),
            scratch_shapes=[pltpu.VMEM((td, c_out), jnp.float32)],  # running max
        ),
        compiler_params=pltpu.CompilerParams(
            # dst tiles are independent (megacore-shardable on v7x);
            # src tiles are the reduction axis.
            dimension_semantics=("parallel", "arbitrary")),
    )(hT, adj_p)
    return out[:n]


# ---------------------------------------------------------------------------
# FPS + gather: data-dependent sequential glue, stays in plain JAX.
# ---------------------------------------------------------------------------
def fps_one_graph(pos, n_samples):
    """Farthest point sampling on one graph, returning local indices.

    TODO(synk): torch_geometric's fps uses a random start node; we start
    deterministically at node 0 (same algorithm otherwise)."""
    sel = jnp.zeros((n_samples,), dtype=jnp.int32)              # sel[0] = 0
    d2 = jnp.full((pos.shape[0],), jnp.inf, dtype=jnp.float32)

    def body(i, carry):
        sel, d2, last = carry
        dist = jnp.sum(jnp.square(pos - pos[last]), axis=-1)
        d2 = jnp.minimum(d2, dist)
        nxt = jnp.argmax(d2).astype(jnp.int32)
        sel = sel.at[i].set(nxt)
        return sel, d2, nxt

    sel, _, _ = lax.fori_loop(1, n_samples, body, (sel, d2, jnp.int32(0)))
    return sel


if __name__ == "__main__":
    # ---- small, deterministic synthetic problem ----
    in_channels, out_channels = 4, 8
    perc_down = 0.5
    points_per_graph = 32
    num_graphs = 2
    N = points_per_graph * num_graphs

    key = jax.random.PRNGKey(0)
    k1, k2, k3, k4 = jax.random.split(key, 4)

    x = jax.random.normal(k1, (N, in_channels), dtype=jnp.float32)       # data.x
    pos = jax.random.normal(k2, (N, 3), dtype=jnp.float32)               # data.pos
    batch = jnp.repeat(jnp.arange(num_graphs, dtype=jnp.int32), points_per_graph)

    # Deterministic parameter init (nn.Linear(in, out) + BatchNorm1d(out)).
    bound = 1.0 / np.sqrt(in_channels)
    w = jax.random.uniform(k3, (in_channels, out_channels), minval=-bound,
                           maxval=bound, dtype=jnp.float32)
    b = jax.random.uniform(k4, (out_channels,), minval=-bound,
                           maxval=bound, dtype=jnp.float32)
    gamma = jnp.ones((out_channels,), jnp.float32)    # BatchNorm1d weight init
    beta = jnp.zeros((out_channels,), jnp.float32)    # BatchNorm1d bias init
    # Note: self.linear from __init__ is unused in forward(), so it is omitted.

    # Deterministic ring graph per graph (undirected) + self loops, as int8.
    adj_np = np.zeros((N, N), dtype=np.int8)
    for g in range(num_graphs):
        off = g * points_per_graph
        for i in range(points_per_graph):
            src = off + i
            dst = off + (i + 1) % points_per_graph
            adj_np[dst, src] = 1
            adj_np[src, dst] = 1
    np.fill_diagonal(adj_np, 1)
    adj_i8 = jnp.asarray(adj_np)

    # ---- hot path: two Pallas kernels ----
    pooled = point_trans_down_features(x, w, b, gamma, beta, adj_i8)

    # ---- pure-JAX reference check (small N only) ----
    h_ref = jnp.dot(x, w) + b
    mean = jnp.mean(h_ref, axis=0, keepdims=True)
    var = jnp.mean(jnp.square(h_ref - mean), axis=0, keepdims=True)
    h_ref = jnp.maximum((h_ref - mean) * lax.rsqrt(var + 1e-5) * gamma + beta, 0.0)
    ref_pool = jnp.max(
        jnp.where(adj_i8.astype(jnp.float32)[:, :, None] > 0,
                  h_ref[None, :, :], -jnp.inf),
        axis=1)
    assert bool(jnp.allclose(pooled, ref_pool, atol=1e-3, rtol=1e-3)), \
        "Pallas kernels disagree with JAX reference"

    # ---- FPS per graph (ratio = perc_down), then sorted indices ----
    n_samples = int(np.ceil(perc_down * points_per_graph))
    idx_parts = []
    for g in range(num_graphs):
        off = g * points_per_graph
        local = fps_one_graph(pos[off:off + points_per_graph], n_samples)
        idx_parts.append(local + off)
    index = jnp.sort(jnp.concatenate(idx_parts))

    # ---- subsample x / pos / batch at the selected (sorted) indices ----
    new_x = pooled[index, :]
    new_pos = pos[index]
    new_batch = batch[index]

    jax.block_until_ready((new_x, new_pos, new_batch))
    assert new_x.shape == (num_graphs * n_samples, out_channels)
    assert new_pos.shape == (num_graphs * n_samples, 3)
    assert new_batch.shape == (num_graphs * n_samples,)
    print("KERNEL_OK")
</pallas_src>

<mosaic_0001>
module attributes {stable_mosaic.version = 11 : i64} {
  func.func @_linear_bn_relu_T_kernel(%arg0: memref<4x64xf32, #tpu.memory_space<vmem>>, %arg1: memref<8x4xf32, #tpu.memory_space<vmem>>, %arg2: memref<8x1xf32, #tpu.memory_space<vmem>>, %arg3: memref<8x1xf32, #tpu.memory_space<vmem>>, %arg4: memref<8x1xf32, #tpu.memory_space<vmem>>, %arg5: memref<8x128xf32, #tpu.memory_space<vmem>>) attributes {dimension_semantics = [], scalar_prefetch = 0 : i64, scratch_operands = 0 : i64, tpu.core_type = #tpu.core_type<tc>} {
    %c0 = arith.constant 0 : index
    %c0_0 = arith.constant 0 : index
    %0 = vector.load %arg1[%c0, %c0_0] : memref<8x4xf32, #tpu.memory_space<vmem>>, vector<8x4xf32>
    %c0_1 = arith.constant 0 : index
    %c0_2 = arith.constant 0 : index
    %1 = vector.load %arg0[%c0_1, %c0_2] : memref<4x64xf32, #tpu.memory_space<vmem>>, vector<4x64xf32>
    %cst = arith.constant dense<0.000000e+00> : vector<8x64xf32>
    %2 = tpu.matmul %0, %1, %cst {dimension_numbers = #tpu.dot_dimension_numbers<[1], [0], [0], [1], [0, 0, 1, 1], [], []>} : vector<8x4xf32>, vector<4x64xf32>, vector<8x64xf32> -> vector<8x64xf32>
    %c0_3 = arith.constant 0 : index
    %c0_4 = arith.constant 0 : index
    %3 = vector.load %arg2[%c0_3, %c0_4] : memref<8x1xf32, #tpu.memory_space<vmem>>, vector<8x1xf32>
    %4 = vector.broadcast %3 : vector<8x1xf32> to vector<8x64xf32>
    %5 = arith.addf %2, %4 : vector<8x64xf32>
    %cst_5 = arith.constant dense<0.000000e+00> : vector<8xf32>
    %6 = vector.multi_reduction <add>, %5, %cst_5 [1] : vector<8x64xf32> to vector<8xf32>
    %7 = vector.shape_cast %6 : vector<8xf32> to vector<8x1xf32>
    %cst_6 = arith.constant 6.400000e+01 : f32
    %8 = vector.broadcast %cst_6 : f32 to vector<8x1xf32>
    %9 = arith.divf %7, %8 : vector<8x1xf32>
    %10 = vector.broadcast %9 : vector<8x1xf32> to vector<8x64xf32>
    %11 = arith.subf %5, %10 : vector<8x64xf32>
    %12 = arith.mulf %11, %11 : vector<8x64xf32>
    %cst_7 = arith.constant dense<0.000000e+00> : vector<8xf32>
    %13 = vector.multi_reduction <add>, %12, %cst_7 [1] : vector<8x64xf32> to vector<8xf32>
    %14 = vector.shape_cast %13 : vector<8xf32> to vector<8x1xf32>
    %cst_8 = arith.constant 6.400000e+01 : f32
    %15 = vector.broadcast %cst_8 : f32 to vector<8x1xf32>
    %16 = arith.divf %14, %15 : vector<8x1xf32>
    %c0_9 = arith.constant 0 : index
    %c0_10 = arith.constant 0 : index
    %17 = vector.load %arg3[%c0_9, %c0_10] : memref<8x1xf32, #tpu.memory_space<vmem>>, vector<8x1xf32>
    %cst_11 = arith.constant 9.99999974E-6 : f32
    %18 = vector.broadcast %cst_11 : f32 to vector<8x1xf32>
    %19 = arith.addf %16, %18 : vector<8x1xf32>
    %20 = math.rsqrt %19 : vector<8x1xf32>
    %21 = arith.mulf %17, %20 : vector<8x1xf32>
    %c0_12 = arith.constant 0 : index
    %c0_13 = arith.constant 0 : index
    %22 = vector.load %arg4[%c0_12, %c0_13] : memref<8x1xf32, #tpu.memory_space<vmem>>, vector<8x1xf32>
    %23 = arith.mulf %9, %21 : vector<8x1xf32>
    %24 = arith.subf %22, %23 : vector<8x1xf32>
    %25 = vector.broadcast %21 : vector<8x1xf32> to vector<8x64xf32>
    %26 = arith.mulf %5, %25 : vector<8x64xf32>
    %27 = vector.broadcast %24 : vector<8x1xf32> to vector<8x64xf32>
    %28 = arith.addf %26, %27 : vector<8x64xf32>
    %cst_14 = arith.constant 0.000000e+00 : f32
    %29 = vector.broadcast %cst_14 : f32 to vector<8x64xf32>
    %30 = arith.maximumf %28, %29 : vector<8x64xf32>
    %cst_15 = arith.constant 0.000000e+00 : f32
    %31 = vector.broadcast %cst_15 : f32 to vector<8x128xf32>
    %c0_16 = arith.constant 0 : index
    %c0_17 = arith.constant 0 : index
    %32 = vector.load %arg5[%c0_16, %c0_17] : memref<8x128xf32, #tpu.memory_space<vmem>>, vector<8x128xf32>
    tpu.vector_store %arg5[%c0_16, %c0_17], %31 {strides = array<i32>} : memref<8x128xf32, #tpu.memory_space<vmem>>, vector<8x128xf32>,
    %c0_18 = arith.constant 0 : index
    %c0_19 = arith.constant 0 : index
    %33 = vector.load %arg5[%c0_18, %c0_19] : memref<8x128xf32, #tpu.memory_space<vmem>>, vector<8x64xf32>
    tpu.vector_store %arg5[%c0_18, %c0_19], %30 {strides = array<i32>} : memref<8x128xf32, #tpu.memory_space<vmem>>, vector<8x64xf32>,
    return
  }
}

</mosaic_0001>

<bundles_post_ra>
// kernel: tpu_custom_call.1
= control target key start
LH: loop header
LB: loop body
LE: loop exit
PB: predicated region body
PF: predicated region fallthrough
CT: control target
= control target key end

     0   :  { %vm33_vm0 = vcmask 1043456   ;;  %v194_v2 = vmov 0.0   ;;  %vm195_vm1 = vmmov 0   ;;  %vm29_vm2 = vcmask 31744   ;;  %s249_s0 = inlined_call_operand.vmem [shape: f32[4,64], index: 0, kind: input, shape index: {}]   ;;  %s250_s1 = inlined_call_operand.vmem [shape: f32[8,4], index: 1, kind: input, shape index: {}]   ;;  %s251_s2 = inlined_call_operand.vmem [shape: f32[8,1], index: 2, kind: input, shape index: {}]   ;;  %s252_s3 = inlined_call_operand.vmem [shape: f32[8,1], index: 3, kind: input, shape index: {}]   ;;  %s253_s4 = inlined_call_operand.vmem [shape: f32[8,1], index: 4, kind: input, shape index: {}]   ;;  %s254_s5 = inlined_call_operand.hbm [shape: f32[8,128], index: 5, kind: output, shape index: {}]  }
   0x1   :  { %v22_v0 = vld [vmem:[%s249_s0] sm:$0xf]  ;;  %159 = vmatprep.subr.mxu0 %v194_v2  ;;  %139 = vst [vmem:[#allocation2] sm:$0xff] %v194_v2  ;;  %161 = vmatprep.mubr.msk.f32.mxu0 %vm195_vm1, %v194_v2 }
   0x2   :  { %v21_v1 = vld [vmem:[%s250_s1] sm:$0xff] }
   0x3   :  { %v23_v3 = vld [vmem:[%s251_s2] sm:$0xff] }
   0x4   :  { %10 = vsyncpa [#allocation3], 0  ;;  %160 = vmatpush3.msk.msra.mxu0 %vm33_vm0, %v22_v0  ;;  %v196_v4 = vmov 0   ;;  %vm107_vm3 = vcmask 523264   ;;  %v119_v18 = vld [vmem:[%s252_s3] sm:$0xff]  ;;  %s197_s25 = smov [#allocation2]  }
   0x5   :  { %168 = vset.pattern.permute.xlu0 %v196_v4  ;;  %162 = vmatmul.mubr.msk.f32.vlgmr.msra.gmra.mxu0 %vm29_vm2, %v21_v1  ;;  %v123_v21 = vld [vmem:[%s253_s4] sm:$0xff]  ;;  %s147_s26 = sshll.u32 %s197_s25, 4  ;;  %s148_s26 = int_to_ptr.vmem [resolvable:$true] %s147_s26 }
   0x6   :  { %26 = vperm.xlu0 %168, %v23_v3   ;;  %169 = vset.pattern.permute.xlu1 %v196_v4  ;;  %s172_s3 = scalar_lea.vmem %s148_s26, 128  ;;  %p177_p1 = scmp.lt.s32.totalorder %s148_s26, %s148_s26 }
   0x7   :  { %p173_p0 = scmp.ne.s32.totalorder %s148_s26, %s172_s3  ;;  %p178_p2 = scmp.lt.s32.totalorder %s172_s3, %s172_s3 }
   0x9   :  { %p179_p3 = por %p178_p2, %p177_p1 }
   0xb   :  { %p180_p4 = pnand %p179_p3, %p173_p0 }
  0x81   :  { %v27_v5 = vpop.permute.xlu0 %26 }
  0xc5   :  { %v103_v6 = vpop.f32.mrf.mxu0 }
  0xc6   :  { %v104_v7 = vadd.f32 %v103_v6, %v27_v5 }
  0xc7   :  { %v163_v8 = vpop.f32.mrf.mxu0 }
  0xc8   :  { %v108_v9 = vsel %vm107_vm3, %v104_v7, 0.0 }
  0xc9   :  { %109 = vadd.xlane.f32.xlu0 %v108_v9 }
 0x152   :  { %v110_v10 = vpop.xlane.xlu0 %109 }
 0x153   :  { %v112_v11 = vmul.f32 0.015625, %v110_v10 }
 0x155   :  { %v113_v12 = vsub.f32 %v104_v7, %v112_v11 }
 0x157   :  { %v114_v13 = vmul.f32 %v113_v12, %v113_v12 }
 0x159   :  { %v115_v14 = vsel %vm107_vm3, %v114_v13, 0.0 }
 0x15a   :  { %116 = vadd.xlane.f32.xlu1 %v115_v14 }
 0x1e3   :  { %v117_v15 = vpop.xlane.xlu1 %116 }
 0x1e4   :  { %v118_v16 = vmul.f32 0.015625, %v117_v15 }
 0x1e6   :  { %v120_v17 = vadd.f32 1e-05, %v118_v16 }
 0x1e8   :  { %170 = vrsqrt.f32 %v120_v17 }
 0x1f5   :  { %v171_v19 = vpop.eup %170 }
 0x1f6   :  { %v122_v20 = vmul.f32 %v171_v19, %v119_v18 }
 0x1f8   :  { %128 = vperm.xlu1 %169, %v122_v20   ;;  %v124_v22 = vmul.f32 %v122_v20, %v112_v11 }
 0x1fa   :  { %v125_v23 = vsub.f32 %v123_v21, %v124_v22 }
 0x1fc   :  { %134 = vperm.xlu1 %169, %v125_v23  }
 0x273   :  { %v129_v24 = vpop.permute.xlu1 %128 }
 0x274   :  { %v131_v25 = vmul.f32 %v129_v24, %v104_v7 }
 0x277   :  { %v135_v26 = vpop.permute.xlu1 %134 }
 0x278   :  { %v137_v27 = vadd.f32 %v135_v26, %v131_v25 }
 0x27a   :  { %v138_v28 = vmax.f32 %v137_v27, 0.0 }
 0x27c   :  { %140 = vst.msk [vmem:[#allocation2] sm:$0xff] %vm107_vm3, %v138_v28 }
 0x27d   :  { %183 = shalt.err (!%p180_p4)
}
 0x27e   :  { %150 = dma.vmem_to_hbm [thread:$0]  %s148_s26, 128, %s254_s5, [#allocation3]  }
 0x27f   :  { %192 = dma.done.wait [#allocation3], 128  }
 0x280   :  { %193 = vsyncadd [#allocation3], 4294967168 }
 0x281   :  { %154 = vsyncpa [#allocation3], 1 }

</bundles_post_ra>
